<compile_context>
chip_gen: v5e
topology: v5e:2x2
jax: 0.10.0
libtpu: 0.0.40
codegen_flags: <defaults>
</compile_context>

<pallas_src>
import functools
import math

import jax
import jax.numpy as jnp
from jax import lax
from jax.experimental import pallas as pl
from jax.experimental.pallas import tpu as pltpu

LANES = 128
MAX_BLK_ROWS = 2048  # 2048 * 128 * 4B = 1 MiB per input block (f32)


def _round_up(x, m):
    return ((x + m - 1) // m) * m


def _partial_sums(pd, gt, valid, pw):
    """Per-block partial sums of pd*gt and the union term, as (1, LANES) f32."""
    if valid is not None:
        # Select (not multiply) so stale/garbage rows of a ragged last block
        # can never poison the sums (0 * NaN would).
        pd = jnp.where(valid, pd, 0.0)
        gt = jnp.where(valid, gt, 0.0)
    inter = pd * gt
    if pw == 2:
        s = pd + gt
        aux = s * s                      # sum(pd^2+gt^2) = sum(aux) - 2*sum(inter)
    else:
        aux = pd ** pw + gt ** pw        # general p: aux is the union term directly
    return (jnp.sum(inter, axis=0, keepdims=True),
            jnp.sum(aux, axis=0, keepdims=True))


def _dice_kernel(p_ref, t_ref, pg_ref, aux_ref, *, pw, total_rows, blk_rows):
    """flag is None: pure flat reduction; only the ragged last block is masked."""
    def emit(valid):
        pd = p_ref[...].astype(jnp.float32)
        gt = t_ref[...].astype(jnp.float32)
        pg, ax = _partial_sums(pd, gt, valid, pw)
        pg_ref[0] = pg
        aux_ref[0] = ax

    rem = total_rows % blk_rows
    if rem == 0:
        emit(None)                       # no masking anywhere
    else:
        j = pl.program_id(0)
        last = pl.num_programs(0) - 1

        @pl.when(j < last)
        def _():
            emit(None)                   # full blocks: zero masking overhead

        @pl.when(j == last)
        def _():
            row = lax.broadcasted_iota(jnp.int32, (blk_rows, LANES), 0)
            emit(row < rem)


def _dice_kernel_flagged(w_ref, p_ref, t_ref, pg_ref, aux_ref, *, pw):
    """flag path: per-row 0/1 weight column (also encodes the ragged tail)."""
    has_valid = jnp.max(w_ref[...]) > 0.0

    @pl.when(has_valid)
    def _():
        pd = p_ref[...].astype(jnp.float32)
        gt = t_ref[...].astype(jnp.float32)
        wfull = jnp.broadcast_to(w_ref[...], pd.shape)   # (blk_rows, 1) -> lanes
        pg, ax = _partial_sums(pd, gt, wfull > 0.0, pw)
        pg_ref[0] = pg
        aux_ref[0] = ax

    @pl.when(jnp.logical_not(has_valid))
    def _():
        # Whole block excluded by flag: skip all vector work, emit zeros.
        pg_ref[...] = jnp.zeros_like(pg_ref)
        aux_ref[...] = jnp.zeros_like(aux_ref)


def binary_dice_loss(predict, target, flag=None, *, smooth=1.0, p=2,
                     max_blk_rows=MAX_BLK_ROWS):
    """JAX/Pallas equivalent of BinaryDiceLoss(smooth, p).forward(predict, target, flag)."""
    assert predict.shape[0] == target.shape[0], \
        "predict & target batch size don't match"
    n = predict.shape[0]
    d = math.prod(int(s) for s in predict.shape[1:]) if predict.ndim > 1 else 1

    # View every sample as (rows, 128); collapse batch into the row axis.
    rows = pl.cdiv(d, LANES)             # rows per sample
    d_row = rows * LANES
    pflat = predict.reshape(n, d)
    tflat = target.reshape(n, d)
    if d_row != d:
        # Only pad the lane tail (< 128 elems/sample); zeros are neutral for
        # both the product and the power sums.
        pflat = jnp.pad(pflat, ((0, 0), (0, d_row - d)))
        tflat = jnp.pad(tflat, ((0, 0), (0, d_row - d)))
    R = n * rows                         # total rows of the flat (R, 128) view
    blk_rows = min(_round_up(max_blk_rows, 8), _round_up(R, 8))
    nblk = pl.cdiv(R, blk_rows)
    r_blocks = nblk * blk_rows

    p2 = pflat.reshape(R, LANES)
    t2 = tflat.reshape(R, LANES)

    data_spec = pl.BlockSpec((blk_rows, LANES), lambda j: (j, 0))
    out_shape = (jax.ShapeDtypeStruct((nblk, 1, LANES), jnp.float32),
                 jax.ShapeDtypeStruct((nblk, 1, LANES), jnp.float32))
    out_specs = (pl.BlockSpec((1, 1, LANES), lambda j: (j, 0, 0)),
                 pl.BlockSpec((1, 1, LANES), lambda j: (j, 0, 0)))
    cparams = pltpu.CompilerParams(dimension_semantics=("parallel",))

    if flag is None:
        kernel = functools.partial(_dice_kernel, pw=p, total_rows=R,
                                   blk_rows=blk_rows)
        pg_out, aux_out = pl.pallas_call(
            kernel,
            out_shape=out_shape,
            grid=(nblk,),
            in_specs=[data_spec, data_spec],
            out_specs=out_specs,
            compiler_params=cparams,
        )(p2, t2)
    else:
        # Per-sample inclusion (the torch `if flag[i,0] > 0:` loop) expanded to a
        # tiny per-row 0/1 column; rows past R are padded with 0 so the column
        # also masks the ragged last block.
        w = (flag.reshape(n, -1)[:, 0] > 0).astype(jnp.float32)
        w_row = jnp.broadcast_to(w[:, None], (n, rows)).reshape(R)
        if r_blocks != R:
            w_row = jnp.pad(w_row, (0, r_blocks - R))
        w_row = w_row.reshape(r_blocks, 1)

        kernel = functools.partial(_dice_kernel_flagged, pw=p)
        pg_out, aux_out = pl.pallas_call(
            kernel,
            out_shape=out_shape,
            grid=(nblk,),
            in_specs=[pl.BlockSpec((blk_rows, 1), lambda j: (j, 0)),
                      data_spec, data_spec],
            out_specs=out_specs,
            compiler_params=cparams,
        )(w_row, p2, t2)

    # Tiny final combine over the (nblk, 1, 128) partials.
    sum_pg = jnp.sum(pg_out)
    sum_aux = jnp.sum(aux_out)
    intersection = jnp.float32(smooth) + 2.0 * sum_pg
    if p == 2:
        union = jnp.float32(smooth) + (sum_aux - 2.0 * sum_pg)
    else:
        union = jnp.float32(smooth) + sum_aux
    return 1.0 - intersection / union


class BinaryDiceLoss:
    """Thin wrapper mirroring the nn.Module interface."""

    def __init__(self, smooth=1, p=2):
        self.smooth = smooth
        self.p = p

    def __call__(self, predict, target, flag=None):
        return binary_dice_loss(predict, target, flag,
                                smooth=self.smooth, p=self.p)


def _reference(predict, target, flag, smooth=1.0, p=2):
    n = predict.shape[0]
    pd = predict.reshape(n, -1).astype(jnp.float32)
    gt = target.reshape(n, -1).astype(jnp.float32)
    if flag is None:
        w = jnp.ones((n,), jnp.float32)
    else:
        w = (flag.reshape(n, -1)[:, 0] > 0).astype(jnp.float32)
    inter = smooth + 2.0 * jnp.sum(w[:, None] * pd * gt)
    union = smooth + jnp.sum(w[:, None] * (pd ** p + gt ** p))
    return 1.0 - inter / union


if __name__ == "__main__":
    key = jax.random.PRNGKey(0)
    k1, k2, k3, k4, k5, k6 = jax.random.split(key, 6)

    checks = []

    # Case 1: [2, 4, 16, 16], flag=None and per-sample flag.
    predict = jax.random.uniform(k1, (2, 4, 16, 16), dtype=jnp.float32)
    target = (jax.random.uniform(k2, (2, 4, 16, 16)) > 0.5).astype(jnp.float32)
    flag = jnp.array([[1.0], [0.0]], dtype=jnp.float32)
    checks.append((binary_dice_loss(predict, target, None),
                   _reference(predict, target, None)))
    checks.append((binary_dice_loss(predict, target, flag),
                   _reference(predict, target, flag)))

    # Case 2: multi-block grid (small max_blk_rows) incl. a fully excluded block.
    predict2 = jax.random.uniform(k3, (4, 8, 8, 8), dtype=jnp.float32)
    target2 = (jax.random.uniform(k4, (4, 8, 8, 8)) > 0.5).astype(jnp.float32)
    flag2 = jnp.array([[1.0], [0.0], [0.0], [0.0]], dtype=jnp.float32)
    checks.append((binary_dice_loss(predict2, target2, None, max_blk_rows=8),
                   _reference(predict2, target2, None)))
    checks.append((binary_dice_loss(predict2, target2, flag2, max_blk_rows=8),
                   _reference(predict2, target2, flag2)))

    # Case 3: ragged shapes (D % 128 != 0, R % 8 != 0) with and without flag.
    predict3 = jax.random.uniform(k5, (3, 5, 7, 9), dtype=jnp.float32)
    target3 = (jax.random.uniform(k6, (3, 5, 7, 9)) > 0.5).astype(jnp.float32)
    flag3 = jnp.array([[1.0], [0.0], [1.0]], dtype=jnp.float32)
    checks.append((binary_dice_loss(predict3, target3, None),
                   _reference(predict3, target3, None)))
    checks.append((binary_dice_loss(predict3, target3, flag3),
                   _reference(predict3, target3, flag3)))

    for got, want in checks:
        got = jax.block_until_ready(got)
        assert jnp.allclose(got, want, rtol=1e-5, atol=1e-5), (got, want)

    print("KERNEL_OK")
</pallas_src>

<mosaic_0001>
module attributes {stable_mosaic.version = 11 : i64} {
  func.func @_dice_kernel(%arg0: i32, %arg1: memref<16x128xf32, #tpu.memory_space<vmem>>, %arg2: memref<16x128xf32, #tpu.memory_space<vmem>>, %arg3: memref<1x1x128xf32, #tpu.memory_space<vmem>>, %arg4: memref<1x1x128xf32, #tpu.memory_space<vmem>>) attributes {dimension_semantics = [#tpu.dimension_semantics<parallel>], iteration_bounds = array<i64: 1>, scalar_prefetch = 0 : i64, scratch_operands = 0 : i64, tpu.core_type = #tpu.core_type<tc>, window_params = [{transform_indices = @transform_0, window_bounds = array<i64: 16, 128>}, {transform_indices = @transform_1, window_bounds = array<i64: 16, 128>}, {transform_indices = @transform_2, window_bounds = array<i64: 1, 1, 128>}, {transform_indices = @transform_3, window_bounds = array<i64: 1, 1, 128>}]} {
    %c0 = arith.constant 0 : index
    %c0_0 = arith.constant 0 : index
    %0 = vector.load %arg1[%c0, %c0_0] : memref<16x128xf32, #tpu.memory_space<vmem>>, vector<16x128xf32>
    %c0_1 = arith.constant 0 : index
    %c0_2 = arith.constant 0 : index
    %1 = vector.load %arg2[%c0_1, %c0_2] : memref<16x128xf32, #tpu.memory_space<vmem>>, vector<16x128xf32>
    %2 = arith.mulf %0, %1 : vector<16x128xf32>
    %3 = arith.addf %0, %1 : vector<16x128xf32>
    %4 = arith.mulf %3, %3 : vector<16x128xf32>
    %cst = arith.constant dense<0.000000e+00> : vector<128xf32>
    %5 = vector.multi_reduction <add>, %2, %cst [0] : vector<16x128xf32> to vector<128xf32>
    %6 = vector.shape_cast %5 : vector<128xf32> to vector<1x128xf32>
    %cst_3 = arith.constant dense<0.000000e+00> : vector<128xf32>
    %7 = vector.multi_reduction <add>, %4, %cst_3 [0] : vector<16x128xf32> to vector<128xf32>
    %8 = vector.shape_cast %7 : vector<128xf32> to vector<1x128xf32>
    %c0_4 = arith.constant 0 : index
    %c0_5 = arith.constant 0 : index
    %c0_6 = arith.constant 0 : index
    %9 = vector.load %arg3[%c0_4, %c0_5, %c0_6] : memref<1x1x128xf32, #tpu.memory_space<vmem>>, vector<1x1x128xf32>
    %10 = vector.shape_cast %9 : vector<1x1x128xf32> to vector<1x128xf32>
    %11 = vector.shape_cast %6 : vector<1x128xf32> to vector<1x1x128xf32>
    tpu.vector_store %arg3[%c0_4, %c0_5, %c0_6], %11 {strides = array<i32>} : memref<1x1x128xf32, #tpu.memory_space<vmem>>, vector<1x1x128xf32>,
    %c0_7 = arith.constant 0 : index
    %c0_8 = arith.constant 0 : index
    %c0_9 = arith.constant 0 : index
    %12 = vector.load %arg4[%c0_7, %c0_8, %c0_9] : memref<1x1x128xf32, #tpu.memory_space<vmem>>, vector<1x1x128xf32>
    %13 = vector.shape_cast %12 : vector<1x1x128xf32> to vector<1x128xf32>
    %14 = vector.shape_cast %8 : vector<1x128xf32> to vector<1x1x128xf32>
    tpu.vector_store %arg4[%c0_7, %c0_8, %c0_9], %14 {strides = array<i32>} : memref<1x1x128xf32, #tpu.memory_space<vmem>>, vector<1x1x128xf32>,
    return
  }
  func.func @transform_0(%arg0: i32) -> (i32, i32) {
    %c0_i32 = arith.constant 0 : i32
    %c0_i32_0 = arith.constant 0 : i32
    return %arg0, %c0_i32 : i32, i32
  }
  func.func @transform_1(%arg0: i32) -> (i32, i32) {
    %c0_i32 = arith.constant 0 : i32
    %c0_i32_0 = arith.constant 0 : i32
    return %arg0, %c0_i32 : i32, i32
  }
  func.func @transform_2(%arg0: i32) -> (i32, i32, i32) {
    %c0_i32 = arith.constant 0 : i32
    %c0_i32_0 = arith.constant 0 : i32
    %c0_i32_1 = arith.constant 0 : i32
    return %arg0, %c0_i32, %c0_i32_0 : i32, i32, i32
  }
  func.func @transform_3(%arg0: i32) -> (i32, i32, i32) {
    %c0_i32 = arith.constant 0 : i32
    %c0_i32_0 = arith.constant 0 : i32
    %c0_i32_1 = arith.constant 0 : i32
    return %arg0, %c0_i32, %c0_i32_0 : i32, i32, i32
  }
}

</mosaic_0001>

<bundles_post_ra>
// kernel: tpu_custom_call.1
= control target key start
LH: loop header
LB: loop body
LE: loop exit
PB: predicated region body
PF: predicated region fallthrough
CT: control target
= control target key end

     0   :  { %9 = vsyncpa [#allocation3], 0  ;;  %s255_s0 = inlined_call_operand.hbm [shape: f32[16,128], index: 0, kind: input, shape index: {}]   ;;  %s256_s1 = inlined_call_operand.hbm [shape: f32[16,128], index: 1, kind: input, shape index: {}]   ;;  %s257_s2 = inlined_call_operand.hbm [shape: f32[1,1,128], index: 2, kind: output, shape index: {0}]   ;;  %s258_s3 = inlined_call_operand.hbm [shape: f32[1,1,128], index: 3, kind: output, shape index: {1}]  }
   0x1   :  { %10 = vsyncpa [#allocation6], 0 }
   0x2   :  { %11 = vsyncpa [#allocation4], 0 }
   0x3   :  { %12 = vsyncpa [#allocation9], 0  ;;  %s17_s14 = sshll.u32 %s255_s0, 4  ;;  %s217_s15 = smov [#allocation2]   ;;  %s18_s14 = int_to_ptr.hbm [resolvable:$true] %s17_s14 }
   0x4   :  { %s19_s16 = sshll.u32 %s217_s15, 4  ;;  %s30_s19 = sshll.u32 %s256_s1, 4  ;;  %s20_s16 = int_to_ptr.vmem [resolvable:$true] %s19_s16  ;;  %s31_s19 = int_to_ptr.hbm [resolvable:$true] %s30_s19 }
   0x5   :  { %s218_s20 = smov 128   ;;  %s219_s21 = smov 8  }
   0x6   :  { %25 = dma.hbm_to_vmem [thread:$0]  %s18_s14, 256, %s20_s16, [#allocation3], %s218_s20, %s218_s20, %s219_s21  }
   0x7   :  { %s220_s22 = smov [#allocation5]  }
   0x8   :  { %s32_s23 = sshll.u32 %s220_s22, 4  ;;  %s33_s23 = int_to_ptr.vmem [resolvable:$true] %s32_s23 }
   0x9   :  { %38 = dma.hbm_to_vmem [thread:$0]  %s31_s19, 256, %s33_s23, [#allocation6], %s218_s20, %s218_s20, %s219_s21  }
   0xa   :  { %209 = dma.done.wait [#allocation3], 256  }
   0xb   :  { %210 = vsyncadd [#allocation3], 4294967040 }
   0xc   :  { %211 = dma.done.wait [#allocation6], 256  }
   0xd   :  { %212 = vsyncadd [#allocation6], 4294967040  ;;  %v47_v0 = vld [vmem:[#allocation2] sm:$0xff]  ;;  %v48_v1 = vld [vmem:[#allocation2 + $0x8] sm:$0xff]  ;;  %s221_s0 = smov [#allocation7]   ;;  %s80_s26 = sshll.u32 %s257_s2, 4  ;;  %s81_s26 = int_to_ptr.hbm [resolvable:$true] %s80_s26 }
   0xe   :  { %v49_v2 = vld [vmem:[#allocation5] sm:$0xff]  ;;  %v50_v3 = vld [vmem:[#allocation5 + $0x8] sm:$0xff]  ;;  %s78_s1 = sshll.u32 %s221_s0, 4  ;;  %s222_s27 = smov [#allocation8]   ;;  %s79_s1 = int_to_ptr.vmem [resolvable:$true] %s78_s1 }
   0xf   :  { %v51_v4 = vmul.f32 %v49_v2, %v47_v0  ;;  %v53_v5 = vadd.f32 %v49_v2, %v47_v0  ;;  %v52_v6 = vmul.f32 %v50_v3, %v48_v1  ;;  %v54_v7 = vadd.f32 %v50_v3, %v48_v1  ;;  %s89_s28 = sshll.u32 %s222_s27, 4  ;;  %s91_s4 = sshll.u32 %s258_s3, 4  ;;  %s90_s28 = int_to_ptr.vmem [resolvable:$true] %s89_s28  ;;  %s92_s4 = int_to_ptr.hbm [resolvable:$true] %s91_s4 }
  0x11   :  { %v55_v8 = vmul.f32 %v53_v5, %v53_v5  ;;  %v57_v9 = vadd.f32 %v52_v6, %v51_v4  ;;  %v56_v10 = vmul.f32 %v54_v7, %v54_v7 }
  0x13   :  { %v58_v11 = vrot.slane %v57_v9, 4  ;;  %v64_v12 = vadd.f32 %v56_v10, %v55_v8 }
  0x15   :  { %v59_v13 = vadd.f32 %v58_v11, %v57_v9  ;;  %v65_v14 = vrot.slane %v64_v12, 4 }
  0x17   :  { %v60_v15 = vrot.slane %v59_v13, 2  ;;  %v66_v16 = vadd.f32 %v65_v14, %v64_v12 }
  0x19   :  { %v61_v17 = vadd.f32 %v60_v15, %v59_v13  ;;  %v67_v18 = vrot.slane %v66_v16, 2 }
  0x1b   :  { %v62_v19 = vrot.slane %v61_v17, 1  ;;  %v68_v20 = vadd.f32 %v67_v18, %v66_v16 }
  0x1d   :  { %v63_v21 = vadd.f32 %v62_v19, %v61_v17  ;;  %v69_v22 = vrot.slane %v68_v20, 1 }
  0x1f   :  { %71 = vst [vmem:[#allocation7] sm:$0x1] %v63_v21  ;;  %v70_v23 = vadd.f32 %v69_v22, %v68_v20 }
  0x20   :  { %83 = dma.vmem_to_hbm [thread:$0]  %s79_s1, 16, %s81_s26, [#allocation4]  }
  0x21   :  { %72 = vst [vmem:[#allocation8] sm:$0x1] %v70_v23 }
  0x22   :  { %94 = dma.vmem_to_hbm [thread:$0]  %s90_s28, 16, %s92_s4, [#allocation9]  }
  0x23   :  { %213 = dma.done.wait [#allocation4], 16  }
  0x24   :  { %214 = vsyncadd [#allocation4], 4294967280 }
  0x25   :  { %215 = dma.done.wait [#allocation9], 16  }
  0x26   :  { %216 = vsyncadd [#allocation9], 4294967280 }
  0x27   :  { %103 = vsyncpa [#allocation3], 1 }
  0x28   :  { %104 = vsyncpa [#allocation6], 1 }
  0x29   :  { %105 = vsyncpa [#allocation4], 1 }
  0x2a   :  { %106 = vsyncpa [#allocation9], 1 }

</bundles_post_ra>
